<compile_context>
chip_gen: v7x
topology: tpu7x:2x2x1
jax: 0.10.0
libtpu: 0.0.40
codegen_flags: <defaults>
</compile_context>

<pallas_src>
import jax
import jax.numpy as jnp
from jax.experimental import pallas as pl
from jax.experimental.pallas import tpu as pltpu


def _fused_concat_conv_bn_relu_kernel(x_ref, y_ref, wx_ref, wy_ref, shift_ref, o_ref):
    # out[Cout, thw] = Wx @ x_blk + Wy @ y_blk   (concat fused as split matmul;
    # BN scale pre-folded into Wx/Wy, so only the additive shift + ReLU remain).
    # Activations arrive as f32 (single HBM pass) and are down-cast to bf16
    # in-register for the native MXU bf16 path; accumulation + affine + ReLU in f32.
    # NOTE: at tiny channel counts (Cx=Cy=4, Cout=8) each dot uses <1% of the MXU
    # array -- fine while HBM-bound; for production channel counts keep Cout and
    # the contraction dim in multiples of 128 (v5e) / 256 (v6e, v7x).
    x_blk = x_ref[0].astype(jnp.bfloat16)            # (Cx, thw)
    y_blk = y_ref[0].astype(jnp.bfloat16)            # (Cy, thw)
    acc = jnp.dot(wx_ref[...], x_blk, preferred_element_type=jnp.float32)
    acc = acc + jnp.dot(wy_ref[...], y_blk, preferred_element_type=jnp.float32)
    out = acc + shift_ref[...]                       # (Cout, thw) + (Cout, 1)
    o_ref[0] = jnp.maximum(out, 0.0).astype(o_ref.dtype)


def _vmem_capacity_bytes():
    """Per-core VMEM capacity (128 MiB v5e/v6e, 64 MiB v7x); conservative fallback."""
    try:
        return int(pltpu.get_tpu_info().vmem_capacity_bytes)
    except Exception:
        return 64 << 20


def _choose_spatial_tile(HW_pad, N, per_lane_bytes, vmem_budget):
    """Largest lane-dense (multiple-of-128) tile dividing HW_pad whose
    double-buffered in+out footprint fits `vmem_budget`, preferring >= 4 total
    grid steps so v7x megacore sharding stays balanced (no cost on v5e/v6e)."""
    cands = [t for t in range(128, HW_pad + 1, 128) if HW_pad % t == 0]
    fit = [t for t in cands if t * per_lane_bytes <= vmem_budget] or [cands[0]]
    for min_steps in (4, 2, 1):
        for t in sorted(fit, reverse=True):
            if N * (HW_pad // t) >= min_steps:
                return t
    return max(fit)


def concat_forward(x_nchw, y_nchw, conv_w, conv_b,
                   bn_gamma, bn_beta, bn_mean, bn_var,
                   eps=1e-5, out_dtype=jnp.float32):
    """x_nchw: (N, Cx, H, W), y_nchw: (N, Cy, H, W), conv_w: (Cout, Cx+Cy, 1, 1)."""
    N, Cx, H, W = x_nchw.shape
    Cy = y_nchw.shape[1]
    Cout = conv_w.shape[0]
    HW = H * W

    # NCHW kept: flatten spatial onto the lane axis. Free reshape, no transpose,
    # and crucially NO wrapper-side dtype cast -> no extra HBM pass.
    xf = x_nchw.reshape(N, Cx, HW)
    yf = y_nchw.reshape(N, Cy, HW)

    # Pad the lane axis up to a multiple of 128 so every store is an unmasked,
    # lane-dense vst (padding is sliced off after the call).
    HW_pad = ((HW + 127) // 128) * 128
    if HW_pad != HW:
        pad = HW_pad - HW
        xf = jnp.pad(xf, ((0, 0), (0, 0), (0, pad)))
        yf = jnp.pad(yf, ((0, 0), (0, 0), (0, pad)))

    # 1x1 conv weight (Cout, Cin, 1, 1) -> (Cout, Cin); split along Cin for the
    # concat fusion, BN scale folded in. Weights are tiny -> bf16 is free.
    w = conv_w[:, :, 0, 0].astype(jnp.float32)                  # (Cout, Cin)
    inv_std = 1.0 / jnp.sqrt(bn_var.astype(jnp.float32) + eps)  # (Cout,)
    scale = bn_gamma.astype(jnp.float32) * inv_std              # (Cout,)
    w_scaled = w * scale[:, None]
    wx = w_scaled[:, :Cx].astype(jnp.bfloat16)                  # (Cout, Cx)
    wy = w_scaled[:, Cx:].astype(jnp.bfloat16)                  # (Cout, Cy)
    shift = (bn_beta.astype(jnp.float32)
             + (conv_b.astype(jnp.float32) - bn_mean.astype(jnp.float32)) * scale
             ).reshape(Cout, 1)                                 # (Cout, 1) f32

    # ---- generation-aware tile sizing + VMEM limit -------------------------
    act_bytes = xf.dtype.itemsize                     # 4 (f32 streamed directly)
    out_bytes = jnp.dtype(out_dtype).itemsize
    per_lane = 2 * ((Cx + Cy) * act_bytes + Cout * out_bytes)   # double-buffered
    vmem_cap = _vmem_capacity_bytes()
    budget = vmem_cap // 4                            # conservative tile budget
    thw = _choose_spatial_tile(HW_pad, N, per_lane, budget)

    weight_bytes = 2 * (wx.size * 2 + wy.size * 2 + shift.size * 4)
    footprint = per_lane * thw + weight_bytes
    vmem_limit = int(min(vmem_cap - (8 << 20),
                         max(footprint + (4 << 20), 32 << 20)))

    grid = (N, HW_pad // thw)

    cost = pl.CostEstimate(
        flops=2 * N * HW_pad * (Cx + Cy) * Cout + 3 * N * HW_pad * Cout,
        transcendentals=0,
        bytes_accessed=(N * HW_pad * (Cx + Cy) * act_bytes
                        + N * HW_pad * Cout * out_bytes
                        + (wx.size + wy.size) * 2 + shift.size * 4),
    )

    out = pl.pallas_call(
        _fused_concat_conv_bn_relu_kernel,
        out_shape=jax.ShapeDtypeStruct((N, Cout, HW_pad), out_dtype),
        grid_spec=pltpu.PrefetchScalarGridSpec(
            num_scalar_prefetch=0,
            grid=grid,
            in_specs=[
                pl.BlockSpec((1, Cx, thw), lambda n, s: (n, 0, s)),
                pl.BlockSpec((1, Cy, thw), lambda n, s: (n, 0, s)),
                pl.BlockSpec((Cout, Cx), lambda n, s: (0, 0)),
                pl.BlockSpec((Cout, Cy), lambda n, s: (0, 0)),
                pl.BlockSpec((Cout, 1), lambda n, s: (0, 0)),
            ],
            out_specs=pl.BlockSpec((1, Cout, thw), lambda n, s: (n, 0, s)),
        ),
        compiler_params=pltpu.CompilerParams(
            dimension_semantics=("parallel", "parallel"),
            vmem_limit_bytes=vmem_limit),
        cost_estimate=cost,
    )(xf, yf, wx, wy, shift)

    # (N, Cout, HW_pad) -> drop lane padding -> (N, Cout, H, W); already NCHW.
    return out[:, :, :HW].reshape(N, Cout, H, W)


def _reference(x_nchw, y_nchw, conv_w, conv_b, bn_gamma, bn_beta, bn_mean, bn_var, eps=1e-5):
    cat = jnp.concatenate([x_nchw, y_nchw], axis=1)                 # (N, Cin, H, W)
    w = conv_w[:, :, 0, 0]                                          # (Cout, Cin)
    conv = jnp.einsum('nchw,oc->nohw', cat, w) + conv_b[None, :, None, None]
    bn = (conv - bn_mean[None, :, None, None]) / jnp.sqrt(bn_var + eps)[None, :, None, None]
    bn = bn * bn_gamma[None, :, None, None] + bn_beta[None, :, None, None]
    return jnp.maximum(bn, 0.0)


if __name__ == "__main__":
    key = jax.random.PRNGKey(0)
    k1, k2, k3, k4, k5, k6, k7, k8 = jax.random.split(key, 8)

    N, Cx, Cy, H, W = 2, 4, 4, 16, 16
    Cin, Cout = Cx + Cy, 8

    x = jax.random.normal(k1, (N, Cx, H, W), jnp.float32)
    y = jax.random.normal(k2, (N, Cy, H, W), jnp.float32)

    # deterministic synthetic parameters (module shapes from __init__, eval-mode BN)
    conv_w = jax.random.normal(k3, (Cout, Cin, 1, 1), jnp.float32) * 0.1
    conv_b = jax.random.normal(k4, (Cout,), jnp.float32) * 0.1
    bn_gamma = 1.0 + 0.1 * jax.random.normal(k5, (Cout,), jnp.float32)
    bn_beta = 0.1 * jax.random.normal(k6, (Cout,), jnp.float32)
    bn_mean = 0.05 * jax.random.normal(k7, (Cout,), jnp.float32)
    bn_var = jnp.abs(1.0 + 0.1 * jax.random.normal(k8, (Cout,), jnp.float32))

    out = concat_forward(x, y, conv_w, conv_b, bn_gamma, bn_beta, bn_mean, bn_var)
    out = jax.block_until_ready(out)

    ref = _reference(x, y, conv_w, conv_b, bn_gamma, bn_beta, bn_mean, bn_var)
    assert out.shape == (N, Cout, H, W), out.shape
    # bf16 MXU path (in-register cast) with f32 accumulation: ~1e-3 level deviation
    # from the f32 PyTorch reference -- acceptable for inference, documented here.
    assert jnp.allclose(out, ref, atol=2e-2, rtol=2e-2), float(jnp.max(jnp.abs(out - ref)))

    print("KERNEL_OK")
</pallas_src>

<mosaic_0001>
module attributes {stable_mosaic.version = 11 : i64} {
  func.func @_fused_concat_conv_bn_relu_kernel(%arg0: i32, %arg1: i32, %arg2: memref<1x4x128xf32, #tpu.memory_space<vmem>>, %arg3: memref<1x4x128xf32, #tpu.memory_space<vmem>>, %arg4: memref<8x4xbf16, #tpu.memory_space<vmem>>, %arg5: memref<8x4xbf16, #tpu.memory_space<vmem>>, %arg6: memref<8x1xf32, #tpu.memory_space<vmem>>, %arg7: memref<1x8x128xf32, #tpu.memory_space<vmem>>) attributes {dimension_semantics = [#tpu.dimension_semantics<parallel>, #tpu.dimension_semantics<parallel>], iteration_bounds = array<i64: 2, 2>, scalar_prefetch = 0 : i64, scratch_operands = 0 : i64, tpu.core_type = #tpu.core_type<tc>, window_params = [{transform_indices = @transform_0, window_bounds = array<i64: 1, 4, 128>}, {transform_indices = @transform_1, window_bounds = array<i64: 1, 4, 128>}, {pipeline_mode = #tpu.pipeline_mode<synchronous>, transform_indices = @transform_2, window_bounds = array<i64: 8, 4>}, {pipeline_mode = #tpu.pipeline_mode<synchronous>, transform_indices = @transform_3, window_bounds = array<i64: 8, 4>}, {pipeline_mode = #tpu.pipeline_mode<synchronous>, transform_indices = @transform_4, window_bounds = array<i64: 8, 1>}, {transform_indices = @transform_5, window_bounds = array<i64: 1, 8, 128>}]} {
    %c0 = arith.constant 0 : index
    %c0_0 = arith.constant 0 : index
    %c0_1 = arith.constant 0 : index
    %0 = vector.load %arg2[%c0, %c0_0, %c0_1] : memref<1x4x128xf32, #tpu.memory_space<vmem>>, vector<1x4x128xf32>
    %1 = vector.shape_cast %0 : vector<1x4x128xf32> to vector<4x128xf32>
    %2 = arith.truncf %1 : vector<4x128xf32> to vector<4x128xbf16>
    %c0_2 = arith.constant 0 : index
    %c0_3 = arith.constant 0 : index
    %c0_4 = arith.constant 0 : index
    %3 = vector.load %arg3[%c0_2, %c0_3, %c0_4] : memref<1x4x128xf32, #tpu.memory_space<vmem>>, vector<1x4x128xf32>
    %4 = vector.shape_cast %3 : vector<1x4x128xf32> to vector<4x128xf32>
    %5 = arith.truncf %4 : vector<4x128xf32> to vector<4x128xbf16>
    %c0_5 = arith.constant 0 : index
    %c0_6 = arith.constant 0 : index
    %6 = vector.load %arg4[%c0_5, %c0_6] : memref<8x4xbf16, #tpu.memory_space<vmem>>, vector<8x4xbf16>
    %cst = arith.constant dense<0.000000e+00> : vector<8x128xf32>
    %7 = tpu.matmul %6, %2, %cst {dimension_numbers = #tpu.dot_dimension_numbers<[1], [0], [0], [1], [0, 0, 1, 1], [], []>} : vector<8x4xbf16>, vector<4x128xbf16>, vector<8x128xf32> -> vector<8x128xf32>
    %c0_7 = arith.constant 0 : index
    %c0_8 = arith.constant 0 : index
    %8 = vector.load %arg5[%c0_7, %c0_8] : memref<8x4xbf16, #tpu.memory_space<vmem>>, vector<8x4xbf16>
    %cst_9 = arith.constant dense<0.000000e+00> : vector<8x128xf32>
    %9 = tpu.matmul %8, %5, %cst_9 {dimension_numbers = #tpu.dot_dimension_numbers<[1], [0], [0], [1], [0, 0, 1, 1], [], []>} : vector<8x4xbf16>, vector<4x128xbf16>, vector<8x128xf32> -> vector<8x128xf32>
    %10 = arith.addf %7, %9 : vector<8x128xf32>
    %c0_10 = arith.constant 0 : index
    %c0_11 = arith.constant 0 : index
    %11 = vector.load %arg6[%c0_10, %c0_11] : memref<8x1xf32, #tpu.memory_space<vmem>>, vector<8x1xf32>
    %12 = vector.broadcast %11 : vector<8x1xf32> to vector<8x128xf32>
    %13 = arith.addf %10, %12 : vector<8x128xf32>
    %cst_12 = arith.constant 0.000000e+00 : f32
    %14 = vector.broadcast %cst_12 : f32 to vector<8x128xf32>
    %15 = arith.maximumf %13, %14 : vector<8x128xf32>
    %c0_13 = arith.constant 0 : index
    %c0_14 = arith.constant 0 : index
    %c0_15 = arith.constant 0 : index
    %16 = vector.load %arg7[%c0_13, %c0_14, %c0_15] : memref<1x8x128xf32, #tpu.memory_space<vmem>>, vector<1x8x128xf32>
    %17 = vector.shape_cast %16 : vector<1x8x128xf32> to vector<8x128xf32>
    %18 = vector.shape_cast %15 : vector<8x128xf32> to vector<1x8x128xf32>
    tpu.vector_store %arg7[%c0_13, %c0_14, %c0_15], %18 {strides = array<i32>} : memref<1x8x128xf32, #tpu.memory_space<vmem>>, vector<1x8x128xf32>,
    return
  }
  func.func @transform_0(%arg0: i32, %arg1: i32) -> (i32, i32, i32) {
    %c0_i32 = arith.constant 0 : i32
    %c0_i32_0 = arith.constant 0 : i32
    return %arg0, %c0_i32, %arg1 : i32, i32, i32
  }
  func.func @transform_1(%arg0: i32, %arg1: i32) -> (i32, i32, i32) {
    %c0_i32 = arith.constant 0 : i32
    %c0_i32_0 = arith.constant 0 : i32
    return %arg0, %c0_i32, %arg1 : i32, i32, i32
  }
  func.func @transform_2(%arg0: i32, %arg1: i32) -> (i32, i32) {
    %c0_i32 = arith.constant 0 : i32
    %c0_i32_0 = arith.constant 0 : i32
    %c0_i32_1 = arith.constant 0 : i32
    return %c0_i32, %c0_i32_0 : i32, i32
  }
  func.func @transform_3(%arg0: i32, %arg1: i32) -> (i32, i32) {
    %c0_i32 = arith.constant 0 : i32
    %c0_i32_0 = arith.constant 0 : i32
    %c0_i32_1 = arith.constant 0 : i32
    return %c0_i32, %c0_i32_0 : i32, i32
  }
  func.func @transform_4(%arg0: i32, %arg1: i32) -> (i32, i32) {
    %c0_i32 = arith.constant 0 : i32
    %c0_i32_0 = arith.constant 0 : i32
    %c0_i32_1 = arith.constant 0 : i32
    return %c0_i32, %c0_i32_0 : i32, i32
  }
  func.func @transform_5(%arg0: i32, %arg1: i32) -> (i32, i32, i32) {
    %c0_i32 = arith.constant 0 : i32
    %c0_i32_0 = arith.constant 0 : i32
    return %arg0, %c0_i32, %arg1 : i32, i32, i32
  }
}

</mosaic_0001>

<bundles_post_ra>
// kernel: tpu_custom_call.1
= control target key start
LH: loop header
LB: loop body
LE: loop exit
PB: predicated region body
PF: predicated region fallthrough
CT: control target
= control target key end

     0   :  { %10 = vsyncpa [#allocation3], 0  ;;  %s1011_s0 = inlined_call_operand.vmem [shape: f32[2,4,256], index: 0, kind: input, shape index: {}]   ;;  %s1012_s1 = inlined_call_operand.hbm [shape: f32[2,4,256], index: 1, kind: input, shape index: {}]   ;;  %s1013_s2 = inlined_call_operand.vmem [shape: bf16[8,4], index: 2, kind: input, shape index: {}]   ;;  %s1014_s3 = inlined_call_operand.vmem [shape: bf16[8,4], index: 3, kind: input, shape index: {}]   ;;  %s1015_s4 = inlined_call_operand.vmem [shape: f32[8,1], index: 4, kind: input, shape index: {}]   ;;  %s1016_s5 = inlined_call_operand.hbm [shape: f32[2,8,256], index: 5, kind: output, shape index: {}]  }
   0x1   :  { %12 = vsyncpa [#allocation3 + $0x1], 0 }
   0x2   :  { %13 = vsyncpa [#allocation4], 0 }
   0x3   :  { %15 = vsyncpa [#allocation4 + $0x1], 0  ;;  %s800_s18 = smov 0   ;;  %s802_s19 = smov 0  }
   0x4   :  { %s804_s20 = smov 0   ;;  %s806_s21 = smov 0  }
   0x5   :  { %s808_s22 = smov 0   ;;  %s810_s23 = smov 0  }
   0x6   :  { %s812_s24 = smov 0   ;;  %s814_s25 = smov 0  }
   0x7 LB: > { %s518_s26 = sadd.s32 4294967295, %s763_s25   ;;  %s519_s27 = sadd.s32 4294967294, %s763_s25   ;;  %s763_s25 = sphi %s814_s25, %s21_s25   ;;  %s759_s24 = sphi %s812_s24, %s1039_s24   ;;  %s755_s23 = sphi %s810_s23, %s1038_s23   ;;  %s751_s22 = sphi %s808_s22, %s1037_s22   ;;  %s747_s21 = sphi %s806_s21, %s1036_s21   ;;  %s743_s20 = sphi %s804_s20, %s1035_s20   ;;  %s739_s19 = sphi %s802_s19, %s1034_s19   ;;  %s735_s18 = sphi %s800_s18, %s1033_s18  }
   0x8   : > { %s30_s28 = sadd.s32 1, %s755_s23  ;;  %s33_s29 = sadd.s32 1, %s759_s24 }
   0x9   : > { %p31_p0 = scmp.ge.s32.totalorder %s30_s28, 2  ;;  %s70_s30 = sadd.s32 1, %s743_s20 }
   0xa   : > { %p77_p1 = scmp.ne.s32.totalorder %s743_s20, %s739_s19  ;;  %p78_p2 = scmp.eq.s32.totalorder %s763_s25, 0 }
   0xb   : > { %s1041_s28 = smov (%p31_p0, %s30_s28), 0  ;;  %s1043_s29 = smov (!%p31_p0, %s33_s29), %s759_s24 }
   0xc   : > { %1020 = sst [smem:[#allocation8_spill]] %s1041_s28  ;;  %s66_s6 = ssub.s32 %s755_s23, %s1041_s28 }
   0xd   : > { %p853_p3 = por %p78_p2, %p77_p1  ;;  %p35_p4 = scmp.ge.s32.totalorder %s1043_s29, 2 }
   0xe   : > { %p83_p5 = scmp.ne.s32.totalorder %s739_s19, %s735_s18  ;;  %p84_p6 = scmp.eq.s32.totalorder %s518_s26, 0 }
   0xf   : > { %p172_p7 = scmp.eq.s32.totalorder %s518_s26, 3  ;;  %s1045_s29 = smov (%p35_p4, %s1043_s29), 0 }
  0x10   : > { %1022 = sst [smem:[#allocation9_spill]] %s1045_s29  ;;  %p861_p8 = por %p84_p6, %p83_p5 }
  0x11   : > { %p865_p9 = por %p172_p7, %p77_p1  ;;  %s65_s10 = ssub.s32 %s759_s24, %s1045_s29 }
  0x12   : > { %p178_p10 = scmp.eq.s32.totalorder %s519_s27, 3  ;;  %s67_s11 = sor.u32 %s66_s6, %s65_s10 }
  0x13   : > { %s1024_s9 = scalar_select %p865_p9, 1, 0 }
  0x14   : > { %p68_p11 = scmp.eq.s32.totalorder %s67_s11, 0  ;;  %p871_p12 = por %p178_p10, %p83_p5 }
  0x15   : > { %p565_p13 = scmp.lt.s32.totalorder %s763_s25, 4  ;;  %s218_s13 = sand.u32 1, %s743_s20  }
  0x16   : > { %s1025_s12 = scalar_select %p871_p12, 1, 0 }
  0x17   : > { %s878_s14 = scalar_select %p68_p11, %s743_s20, %s70_s30  }
  0x18   : > { %s522_s15 = sshll.u32 %s218_s13, 2  ;;  %s523_s16 = sshll.u32 %s759_s24, 1 }
  0x19   : > { %s227_s17 = sadd.s32 %s755_s23, %s523_s16  ;;  %s222_s26 = scalar_lea.vmem [#allocation2], %s522_s15 }
  0x1a   : > { %s231_s28 = sshll.u32 %s222_s26, 4  ;;  %s524_s29 = sshll.u32 %s227_s17, 6  ;;  %s882_s28 = int_to_ptr.vmem [resolvable:$true] %s231_s28 }
  0x1b   : > { %s887_s10 = scalar_lea.hbm %s1012_s1, %s524_s29  ;;  %p891_p0 = pnand %p565_p13, %p853_p3 }
  0x1c   : > { %s219_s11 = scalar_lea.sflag [#allocation3], %s218_s13  ;;  %s635_s15 = scalar_lea.hbm %s887_s10, 64 }
  0x1d   : > { %p636_p4 = scmp.ne.s32.totalorder %s887_s10, %s635_s15  ;;  %p637_p5 = pneg %p891_p0 }
  0x1e   : > { %s640_s16 = scalar_lea.hbm %s1012_s1, 256  ;;  %p641_p3 = scmp.lt.u32.totalorder %s887_s10, %s1012_s1 }
  0x1f   : > { %p638_p6 = pnand %p637_p5, %p636_p4  ;;  %p642_p10 = scmp.lt.u32.totalorder %s640_s16, %s635_s15 }
  0x20   : > { %p644_p13 = scmp.lt.u32.totalorder %s635_s15, %s887_s10 }
  0x21   : > { %p639_p7 = pneg %p638_p6  ;;  %p643_p11 = por %p642_p10, %p641_p3 }
  0x23   : > { %p645_p1 = por %p644_p13, %p643_p11 }
  0x25   : > { %p646_p2 = pnand %p645_p1, %p639_p7 }
  0x27   : > { %649 = shalt.err (!%p646_p2)
}
  0x28   : > { %s650_s13 = scalar_lea.vmem %s882_s28, 64  ;;  %s765_s27 = smov [#allocation2]  }
  0x29   : > { %p651_p4 = scmp.ne.s32.totalorder %s882_s28, %s650_s13  ;;  %s655_s6 = sshll.u32 %s765_s27, 4  ;;  %s656_s6 = int_to_ptr.vmem [resolvable:$false] %s655_s6 }
  0x2a   : > { %s657_s29 = scalar_lea.vmem %s656_s6, 128  ;;  %p658_p9 = scmp.lt.s32.totalorder %s882_s28, %s656_s6 }
  0x2b   : > { %p653_p6 = pnand %p651_p4, %p637_p5  ;;  %p659_p3 = scmp.lt.s32.totalorder %s657_s29, %s650_s13 }
  0x2d   : > { %p654_p12 = pneg %p653_p6  ;;  %p660_p10 = por %p659_p3, %p658_p9 }
  0x2f   : > { %p661_p11 = pnand %p660_p10, %p654_p12 }
  0x31   : > { %664 = shalt.err (!%p661_p11)
}
  0x32   : > { %560 = dma.hbm_to_vmem [thread:$0]  (!%p891_p0), %s887_s10, 64, %s882_s28, %s219_s11  }
  0x33   : > { %p1027_p1 = scmp.lt.s32.totalorder %s763_s25, 5  ;;  %p1028_p2 = scmp.ge.s32.totalorder %s763_s25, 1 }
  0x35   : > { %p237_p5 = pnand %p1028_p2, %p1027_p1 }
  0x36   : > { %s927_s15 = sand.u32 (!%p237_p5), 1, %s739_s19  }
  0x37   : > { %240 = sbr.rel (%p237_p5) target bundleno = 310 (0x136), region = 40  ;;  %s526_s7 = sshll.u32 (!%p237_p5), %s927_s15, 2 }
  0x38   : > { %s243_s16 = scalar_lea.sflag (!%p237_p5), [#allocation3], %s927_s15  ;;  %s246_s17 = scalar_lea.vmem (!%p237_p5), [#allocation2], %s526_s7 }
  0x3e   : > { %726 = dma.done.wait (%p861_p8), %s243_s16, 64  }
  0x3f   : > { %728 = vsyncadd (%p861_p8), %s243_s16, 4294967232  ;;  %p281_p9 = scmp.lt.s32.totalorder %s751_s22, 1  ;;  %p283_p12 = scmp.lt.s32.totalorder %s747_s21, 1  ;;  %v766_v0 = vmov 0.0   ;;  %vm767_vm0 = vmmov 0   ;;  %v768_v1 = vmov 0  }
  0x40   : > { %541 = vmatprep.subr.bf16.mxu0 %v766_v0  ;;  %547 = vmatprep.subr.bf16.mxu1 %v766_v0  ;;  %v292_v2 = vld [vmem:[%s246_s17] sm:$0xf]  ;;  %vm300_vm1 = vcmask 1041408   ;;  %vm296_vm2 = vcmask 31744   ;;  %p1029_p0 = scmp.ne.s32.totalorder %s1024_s9, 0  ;;  %s769_s7 = smov [#allocation5]  }
  0x41   : > { %s282_s28 = scalar_select %p281_p9, %s751_s22, 1  ;;  %543 = vmatprep.mubr.msk.bf16.mxu0 %vm767_vm0, %v766_v0  ;;  %549 = vmatprep.mubr.msk.bf16.mxu1 %vm767_vm0, %v766_v0  ;;  %v293_v3 = vpack.c.bf16 %v292_v2, %v292_v2  ;;  %v390_v5 = vld [vmem:[%s1015_s4] sm:$0xff] }
  0x42   : > { %s284_s10 = scalar_select %p283_p12, %s747_s21, 1  ;;  %634 = vset.pattern.permute.xlu0 %v768_v1  ;;  %v295_v9 = vld [vmem:[%s1014_s3] sm:$0xf] }
  0x43   : > { %s528_s30 = sshll.u32 %s282_s28, 1  ;;  %393 = vperm.xlu0 %634, %v390_v5   ;;  %v302_v7 = vsel %vm300_vm1, %v293_v3, 0  ;;  %v294_v10 = vld [vmem:[%s1013_s2] sm:$0xf]  ;;  %s669_s16 = sshll.u32 %s769_s7, 4  ;;  %s670_s16 = int_to_ptr.vmem [resolvable:$false] %s669_s16 }
  0x44   : > { %s286_s11 = sadd.s32 %s528_s30, %s284_s10  ;;  %542 = vmatpush3.bf16.msra.mxu0 %v302_v7  ;;  %s527_s10 = sshll.u32 %s927_s15, 3 }
  0x45   : > { %s529_s8 = sshll.u32 %s286_s11, 2  ;;  %s533_s30 = sshll.u32 %s751_s22, 1 }
  0x46   : > { %s288_s27 = scalar_lea.vmem %s1011_s0, %s529_s8  ;;  %s411_s11 = sadd.s32 %s747_s21, %s533_s30 }
  0x47   : > { %v290_v4 = vld [vmem:[%s288_s27] sm:$0xf]  ;;  %544 = vmatmul.mubr.msk.bf16.vlgmr.msra.gmra.mrb[0].mxu0 %vm296_vm2, %v295_v9  ;;  %s534_s8 = sshll.u32 %s411_s11, 7  ;;  %s280_s26 = scalar_lea.vmem [#allocation5], %s527_s10 }
  0x48   : > { %v291_v6 = vpack.c.bf16 %v290_v4, %v290_v4  ;;  %s415_s13 = sshll.u32 %s280_s26, 4  ;;  %s957_s6 = scalar_lea.hbm %s1016_s5, %s534_s8  ;;  %s959_s13 = int_to_ptr.vmem [resolvable:$true] %s415_s13 }
  0x49   : > { %s400_s21 = scalar_lea.sflag [#allocation4], %s927_s15  ;;  %s665_s29 = scalar_lea.vmem %s959_s13, 128 }
  0x4a   : > { %v348_v8 = vsel %vm300_vm1, %v291_v6, 0  ;;  %p666_p8 = scmp.ne.s32.totalorder %s959_s13, %s665_s29  ;;  %s671_s17 = scalar_lea.vmem %s670_s16, 256 }
  0x4b   : > { %548 = vmatpush3.bf16.msra.mxu1 %v348_v8  ;;  %p672_p4 = scmp.lt.s32.totalorder %s959_s13, %s670_s16  ;;  %p673_p6 = scmp.lt.s32.totalorder %s671_s17, %s665_s29 }
  0x4c   : > { %p667_p7 = pnand %p666_p8, %p1029_p0 }
  0x4d   : > { %p674_p3 = por %p673_p6, %p672_p4 }
  0x4e   : > { %550 = vmatmul.mubr.msk.bf16.vlgmr.msra.gmra.mrb[0].mxu1 %vm296_vm2, %v294_v10  ;;  %p668_p13 = pneg %p667_p7 }
  0x50   : > { %p675_p10 = pnand %p674_p3, %p668_p13 }
  0xc2   : > { %v394_v12 = vpop.permute.xlu0 %393 }
 0x11a   : > { %v338_v11 = vpop.f32.mrb[0].mxu0 }
 0x11b   : > { %v545_v13 = vpop.f32.mrb[1].mxu0 }
 0x11c   : > { %v341_v16 = vpop.f32.mrb[2].mxu0 }
 0x11d   : > { %v546_v18 = vpop.f32.mrb[3].mxu0 }
 0x121   : > { %v384_v14 = vpop.f32.mrb[0].mxu1 }
 0x122   : > { %v385_v15 = vadd.f32 %v384_v14, %v338_v11  ;;  %v551_v17 = vpop.f32.mrb[1].mxu1 }
 0x123   : > { %v387_v19 = vpop.f32.mrb[2].mxu1 }
 0x124   : > { %v396_v20 = vadd.f32 %v394_v12, %v385_v15  ;;  %v552_v21 = vpop.f32.mrb[3].mxu1 }
 0x126   : > { %v397_v22 = vmax.f32 %v396_v20, 0.0 }
 0x128   : > { %398 = vst [vmem:[%s280_s26] sm:$0xff] %v397_v22 }
 0x129   : > { %678 = shalt.err (!%p675_p10)
}
 0x12a   : > { %s679_s15 = scalar_lea.hbm %s957_s6, 128  ;;  %s683_s30 = scalar_lea.hbm %s1016_s5, 512 }
 0x12b   : > { %p680_p11 = scmp.ne.s32.totalorder %s957_s6, %s679_s15  ;;  %p684_p5 = scmp.lt.u32.totalorder %s957_s6, %s1016_s5 }
 0x12c   : > { %p685_p9 = scmp.lt.u32.totalorder %s683_s30, %s679_s15  ;;  %p687_p8 = scmp.lt.u32.totalorder %s679_s15, %s957_s6 }
 0x12d   : > { %p681_p1 = pnand %p680_p11, %p1029_p0 }
 0x12e   : > { %p686_p12 = por %p685_p9, %p684_p5 }
 0x12f   : > { %p682_p2 = pneg %p681_p1 }
 0x130   : > { %p688_p7 = por %p687_p8, %p686_p12 }
 0x132   : > { %p689_p13 = pnand %p688_p7, %p682_p2 }
 0x134   : > { %692 = shalt.err (!%p689_p13)
}
 0x135   : > { %555 = dma.vmem_to_hbm [thread:$0]  (%p1029_p0), %s959_s13, 128, %s957_s6, %s400_s21  }
 0x136 PF: > { %p566_p4 = scmp.ge.s32.totalorder %s763_s25, 2  ;;  %s427_s26 = sand.u32 1, %s735_s18  }
 0x137   : > { %p1030_p6 = scmp.ne.s32.totalorder %s1025_s12, 0  ;;  %s428_s27 = scalar_lea.sflag [#allocation4], %s427_s26 }
 0x139   : > { %p562_p3 = pnand %p566_p4, %p1030_p6 }
 0x13b   : > { %730 = dma.done.wait (!%p562_p3), %s428_s27, 128  }
 0x13c   : > { %732 = vsyncadd (!%p562_p3), %s428_s27, 4294967168  ;;  %s21_s25 = sadd.s32 1, %s763_s25   ;;  %s1031_s9 = sld [smem:[#allocation8_spill]] }
 0x13d   : > { %p18_p10 = scmp.ge.s32.totalorder %s21_s25, 6   ;;  %s1032_s13 = sld [smem:[#allocation9_spill]] }
 0x13e   : > { %s1033_s18 = smov %s739_s19  ;;  %s1034_s19 = smov %s743_s20 }
 0x13f   : > { %s1035_s20 = smov %s878_s14  ;;  %s1036_s21 = smov %s755_s23 }
 0x140   : > { %s1037_s22 = smov %s759_s24  ;;  %20 = sbr.rel (!%p18_p10) target bundleno = 7 (0x7), region = 88 }
 0x142   : > { %s1038_s23 = smov %s1031_s9 }
 0x143   : > { %s1039_s24 = smov %s1032_s13 }
 0x147   :  { %433 = vsyncpa [#allocation3], 1 }
 0x148   :  { %435 = vsyncpa [#allocation3 + $0x1], 1 }
 0x149   :  { %436 = vsyncpa [#allocation4], 1 }
 0x14a   :  { %438 = vsyncpa [#allocation4 + $0x1], 1 }

</bundles_post_ra>
